<compile_context>
chip_gen: v5e
topology: v5e:2x2
jax: 0.10.0
libtpu: 0.0.40
codegen_flags: <defaults>
</compile_context>

<pallas_src>
import math

import jax
import jax.numpy as jnp
from jax.experimental import pallas as pl
from jax.experimental.pallas import tpu as pltpu


def _rffhs_kernel_reduce(x_ref, w_ref, beta_ref, y_ref):
    """dim_out == 1: second 'matmul' is a VPU multiply + XLU lane reduction."""
    @pl.when(pl.program_id(1) == 0)
    def _():
        y_ref[...] = jnp.zeros_like(y_ref)

    proj = jnp.dot(x_ref[...], w_ref[...], preferred_element_type=jnp.float32)  # (TN,TDh) f32
    h = jnp.cos(proj)                                                            # f32 (EUP/VPU)
    y_ref[...] += jnp.sum(h * beta_ref[...], axis=-1, keepdims=True)             # (TN, 1)


def _rffhs_kernel_matmul(x_ref, w_ref, beta_ref, y_ref):
    """General dim_out: both contractions on the MXU, f32 accumulation in the output block."""
    @pl.when(pl.program_id(1) == 0)
    def _():
        y_ref[...] = jnp.zeros_like(y_ref)

    proj = jnp.dot(x_ref[...], w_ref[...], preferred_element_type=jnp.float32)  # (TN,TDh) f32
    h = jnp.cos(proj)                                                            # f32
    y_ref[...] += jnp.dot(h.astype(beta_ref.dtype), beta_ref[...],
                          preferred_element_type=jnp.float32)                    # (TN, Dout)


def _round_up(v, m):
    return ((v + m - 1) // m) * m


def _vmem_capacity_bytes():
    """Per-core VMEM capacity; falls back to the smallest supported chip (v7x: 64 MiB/TC)."""
    try:
        cap = getattr(pltpu.get_tpu_info(), "vmem_capacity_bytes", None)
        if cap:
            return int(cap)
    except Exception:
        pass
    return 64 << 20


def rffhs_forward(x, s, w, b, beta, *, block_n=512, block_dh=None, matmul_dtype=None):
    """Fused RffHs forward: y = (sqrt(2/Dh) * cos((x*s) @ W^T + b)) @ beta^T.

    x:    (N, dim_in)           batch of inputs
    s:    (dim_in,)             variable-selection scales (variational sample)
    w:    (dim_hidden, dim_in)  RFF frequencies
    b:    (1, dim_hidden)       RFF phases
    beta: (dim_out, dim_hidden) output-layer weights

    block_n:      batch tile (rows / grid step); sublane-aligned and shrunk to fit VMEM.
                  ~512 is a good default on v5e/v6e (128 MiB VMEM); auto-capped on v7x.
    block_dh:     optional dim_hidden tile (multiple of 128) -> adds a reduction grid axis.
    matmul_dtype: e.g. jnp.bfloat16 to feed the MXU in bf16 (recommended on v6e/v7x);
                  accumulation and elementwise work stay f32.
    """
    n, dim_in = x.shape
    dim_hidden = w.shape[0]
    dim_out = beta.shape[0]
    cdtype = jnp.dtype(matmul_dtype) if matmul_dtype is not None else jnp.dtype(jnp.float32)

    # ---- one-time algebra (wrapper side): fold s, fold bias into the MXU K-dim,
    #      fold the sqrt(2/Dh) scale into beta, pre-transpose (no in-kernel .T) --------------
    x = x.astype(jnp.float32)
    s = jnp.asarray(s, jnp.float32).reshape(dim_in)
    w_t = s[:, None] * jnp.asarray(w, jnp.float32).T                     # (Din, Dh) == (W*diag(s))^T
    bias = jnp.asarray(b, jnp.float32).reshape(1, dim_hidden)            # (1, Dh)
    w_aug = jnp.concatenate([w_t, bias], axis=0)                         # (Din+1, Dh)
    x_aug = jnp.concatenate([x, jnp.ones((n, 1), jnp.float32)], axis=1)  # (N, Din+1)
    beta_s = jnp.asarray(beta, jnp.float32) * jnp.float32(math.sqrt(2.0 / dim_hidden))

    if matmul_dtype is not None:
        x_aug = x_aug.astype(cdtype)
        w_aug = w_aug.astype(cdtype)

    dim_in_aug = dim_in + 1

    # ---- batch tile, aligned to the matmul dtype's sublane packing (8 f32/16 bf16/32 int8) --
    row_align = 8 * (4 // cdtype.itemsize)
    tn = _round_up(max(row_align, min(block_n, _round_up(n, row_align))), row_align)

    # ---- VMEM budget (v5e/v6e: 128 MiB, v7x: 64 MiB per TensorCore) --------------------------
    vmem_cap = _vmem_capacity_bytes()
    budget = int(0.70 * vmem_cap)
    itm_x = cdtype.itemsize
    itm_b = 4 if dim_out == 1 else cdtype.itemsize

    def footprint(tn_, tdh_):
        # conservative: residents counted double-buffered, plus f32 proj/h intermediates
        resident = 2 * dim_in_aug * tdh_ * itm_x + 2 * tdh_ * max(dim_out, 1) * itm_b
        stream = 2 * tn_ * dim_in_aug * itm_x + 2 * tn_ * dim_out * 4
        interm = 4 * tn_ * tdh_ * 4
        return resident + stream + interm

    # ---- dim_hidden tiling: only when resident weights / intermediates blow the budget ------
    if block_dh is None:
        block_dh = dim_hidden
        if dim_hidden % 128 == 0 and footprint(tn, dim_hidden) > budget:
            block_dh = min(dim_hidden, 2048)
            while block_dh > 128 and footprint(tn, block_dh) > budget:
                block_dh //= 2
    block_dh = min(block_dh, dim_hidden)
    if block_dh < dim_hidden:
        assert block_dh % 128 == 0, "block_dh must be a multiple of 128 lanes"
        dh_pad = _round_up(dim_hidden, block_dh)
        if dh_pad != dim_hidden:
            # zero-padded Dh columns contribute cos(0) * 0 == 0 to the output
            w_aug = jnp.pad(w_aug, ((0, 0), (0, dh_pad - dim_hidden)))
            beta_s = jnp.pad(beta_s, ((0, 0), (0, dh_pad - dim_hidden)))
    else:
        dh_pad = dim_hidden
    num_k = dh_pad // block_dh

    # shrink the batch tile if the per-step footprint is still too large (v7x: 64 MiB/TC)
    while tn > row_align and footprint(tn, block_dh) > budget:
        tn = _round_up(max(row_align, tn // 2), row_align)

    grid = (pl.cdiv(n, tn), num_k)            # no wrapper-side padding of x: tail is masked

    # ---- output-layer operand: VPU-reduce for dim_out==1, MXU matmul otherwise --------------
    if dim_out == 1:
        kernel = _rffhs_kernel_reduce
        beta_arg = beta_s.reshape(1, dh_pad)                              # f32 (VPU path)
        beta_block = (1, block_dh)
        beta_map = lambda i, k: (0, k)
    else:
        kernel = _rffhs_kernel_matmul
        beta_arg = beta_s.T                                               # (Dh, Dout)
        if matmul_dtype is not None:
            beta_arg = beta_arg.astype(cdtype)
        beta_block = (block_dh, dim_out)
        beta_map = lambda i, k: (k, 0)

    cost = pl.CostEstimate(
        flops=2 * n * dim_in_aug * dh_pad + 2 * n * dh_pad * dim_out,
        transcendentals=n * dh_pad,
        bytes_accessed=int(x_aug.size * x_aug.dtype.itemsize
                           + w_aug.size * w_aug.dtype.itemsize
                           + beta_arg.size * beta_arg.dtype.itemsize
                           + n * dim_out * 4),
    )
    vmem_limit = max(32 << 20, min(footprint(tn, block_dh) + (8 << 20), int(0.9 * vmem_cap)))

    def _call(resident_mode):
        def spec(shape, index_map, resident):
            if resident and resident_mode is not None:
                return pl.BlockSpec(shape, index_map, pipeline_mode=resident_mode)
            return pl.BlockSpec(shape, index_map)

        weights_resident = num_k == 1   # constant index_map -> single VMEM buffer is enough
        return pl.pallas_call(
            kernel,
            out_shape=jax.ShapeDtypeStruct((n, dim_out), jnp.float32),
            grid=grid,
            in_specs=[
                spec((tn, dim_in_aug), lambda i, k: (i, 0), False),                   # x (streamed)
                spec((dim_in_aug, block_dh), lambda i, k: (0, k), weights_resident),  # [(W*s)^T; b]
                spec(beta_block, beta_map, weights_resident),                         # beta
            ],
            out_specs=pl.BlockSpec((tn, dim_out), lambda i, k: (i, 0)),   # f32 accumulator block
            compiler_params=pltpu.CompilerParams(
                # Batch tiles are independent; dim_hidden (if tiled) is a reduction into the
                # resident output block.  TODO(synk): switch to pltpu.CORE_PARALLEL on v7x if
                # xprof shows the batch axis is not actually split across the 2 TensorCores.
                dimension_semantics=("parallel", "arbitrary"),
                vmem_limit_bytes=int(vmem_limit),
            ),
            cost_estimate=cost,
        )(x_aug, w_aug, beta_arg)

    try:
        return _call(pl.Buffered(1))   # single-buffer the VMEM-resident weights
    except Exception:
        return _call(None)             # fallback: default double-buffering everywhere


if __name__ == "__main__":
    key = jax.random.PRNGKey(0)
    k_x, k_w, k_b, k_eps, k_b1, k_b2, k_w2, k_bp2, k_b3 = jax.random.split(key, 9)

    n, dim_in = 70, 8                  # ragged batch: exercises the masked tail blocks

    x = jax.random.normal(k_x, (n, dim_in), dtype=jnp.float32)

    # logit-normal variational sample of the variable-selection scales
    # (weights_type_layer_in='sample_post', n_samp=None -> single sample)
    s_mu = jnp.zeros((dim_in,), jnp.float32)
    s_logsig = jnp.full((dim_in,), -1.0, jnp.float32)
    eps = jax.random.normal(k_eps, (dim_in,), dtype=jnp.float32)
    s = jax.nn.sigmoid(s_mu + jnp.exp(s_logsig) * eps)                   # (dim_in,)

    def reference(x, s, w, b, beta):
        h = jnp.sqrt(2.0 / w.shape[0]) * jnp.cos((x * s.reshape(1, -1)) @ w.T + b)
        return h @ beta.T

    def check(y, y_ref, atol, what):
        assert y.shape == y_ref.shape, what
        assert jnp.allclose(y, y_ref, atol=atol), f"Pallas kernel mismatch vs reference ({what})"

    # --- RFF features fixed at layer_in init: W ~ N(0, I), b ~ U(0, 2*pi) ---
    dh = 32
    w = jax.random.normal(k_w, (dh, dim_in), dtype=jnp.float32)
    b = jax.random.uniform(k_b, (1, dh), jnp.float32, 0.0, 2.0 * math.pi)

    # 1) dim_out == 1 (the module's usual regression head): VPU-reduce output path
    beta1 = jax.random.normal(k_b1, (1, dh), jnp.float32) / math.sqrt(dh)
    y1 = jax.block_until_ready(rffhs_forward(x, s, w, b, beta1, block_n=16))
    check(y1, reference(x, s, w, b, beta1), 1e-4, "dim_out=1")

    # 2) dim_out > 1: MXU output path
    beta2 = jax.random.normal(k_b2, (4, dh), jnp.float32) / math.sqrt(dh)
    y2 = jax.block_until_ready(rffhs_forward(x, s, w, b, beta2, block_n=16))
    check(y2, reference(x, s, w, b, beta2), 1e-4, "dim_out=4")

    # --- larger hidden layer tiled along dim_hidden (reduction grid axis, acc in output) ---
    dh2 = 256
    w2 = jax.random.normal(k_w2, (dh2, dim_in), dtype=jnp.float32)
    b2 = jax.random.uniform(k_bp2, (1, dh2), jnp.float32, 0.0, 2.0 * math.pi)
    beta3 = jax.random.normal(k_b3, (1, dh2), jnp.float32) / math.sqrt(dh2)
    beta4 = jax.random.normal(k_b3, (4, dh2), jnp.float32) / math.sqrt(dh2)

    y3 = jax.block_until_ready(rffhs_forward(x, s, w2, b2, beta3, block_n=32, block_dh=128))
    check(y3, reference(x, s, w2, b2, beta3), 1e-4, "dim_out=1, tiled dim_hidden")

    y4 = jax.block_until_ready(rffhs_forward(x, s, w2, b2, beta4, block_n=32, block_dh=128))
    check(y4, reference(x, s, w2, b2, beta4), 1e-4, "dim_out=4, tiled dim_hidden")

    # --- bf16 MXU inputs (recommended on v6e/v7x); looser tolerance since bf16 rounds the
    #     cos phase argument -- this is why bf16 is opt-in rather than the default.
    y5 = jax.block_until_ready(
        rffhs_forward(x, s, w2, b2, beta4, block_n=32, matmul_dtype=jnp.bfloat16))
    check(y5, reference(x, s, w2, b2, beta4), 5e-2, "bf16 matmul inputs")

    print("KERNEL_OK")
</pallas_src>

<mosaic_0001>
module attributes {stable_mosaic.version = 11 : i64} {
  func.func @_rffhs_kernel_reduce(%arg0: i32, %arg1: i32, %arg2: memref<16x9xf32, #tpu.memory_space<vmem>>, %arg3: memref<9x32xf32, #tpu.memory_space<vmem>>, %arg4: memref<1x32xf32, #tpu.memory_space<vmem>>, %arg5: memref<16x1xf32, #tpu.memory_space<vmem>>) attributes {dimension_semantics = [#tpu.dimension_semantics<parallel>, #tpu.dimension_semantics<arbitrary>], iteration_bounds = array<i64: 5, 1>, scalar_prefetch = 0 : i64, scratch_operands = 0 : i64, tpu.core_type = #tpu.core_type<tc>, window_params = [{transform_indices = @transform_0, window_bounds = array<i64: 16, 9>}, {pipeline_mode = #tpu.pipeline_mode<synchronous>, transform_indices = @transform_1, window_bounds = array<i64: 9, 32>}, {pipeline_mode = #tpu.pipeline_mode<synchronous>, transform_indices = @transform_2, window_bounds = array<i64: 1, 32>}, {transform_indices = @transform_3, window_bounds = array<i64: 16, 1>}]} {
    %c0_i32 = arith.constant 0 : i32
    %0 = arith.cmpi eq, %arg1, %c0_i32 : i32
    %1 = arith.extui %0 : i1 to i32
    %c0_i32_0 = arith.constant 0 : i32
    %2 = arith.cmpi ne, %1, %c0_i32_0 : i32
    scf.if %2 {
      %cst_11 = arith.constant 0.000000e+00 : f32
      %15 = vector.broadcast %cst_11 : f32 to vector<16x1xf32>
      %c0_12 = arith.constant 0 : index
      %c0_13 = arith.constant 0 : index
      %16 = vector.load %arg5[%c0_12, %c0_13] : memref<16x1xf32, #tpu.memory_space<vmem>>, vector<16x1xf32>
      tpu.vector_store %arg5[%c0_12, %c0_13], %15 {strides = array<i32>} : memref<16x1xf32, #tpu.memory_space<vmem>>, vector<16x1xf32>,
    } else {
    }
    %c0 = arith.constant 0 : index
    %c0_1 = arith.constant 0 : index
    %3 = vector.load %arg2[%c0, %c0_1] : memref<16x9xf32, #tpu.memory_space<vmem>>, vector<16x9xf32>
    %c0_2 = arith.constant 0 : index
    %c0_3 = arith.constant 0 : index
    %4 = vector.load %arg3[%c0_2, %c0_3] : memref<9x32xf32, #tpu.memory_space<vmem>>, vector<9x32xf32>
    %cst = arith.constant dense<0.000000e+00> : vector<16x32xf32>
    %5 = tpu.matmul %3, %4, %cst {dimension_numbers = #tpu.dot_dimension_numbers<[1], [0], [0], [1], [0, 0, 1, 1], [], []>} : vector<16x9xf32>, vector<9x32xf32>, vector<16x32xf32> -> vector<16x32xf32>
    %6 = math.cos %5 : vector<16x32xf32>
    %c0_4 = arith.constant 0 : index
    %c0_5 = arith.constant 0 : index
    %7 = vector.load %arg5[%c0_4, %c0_5] : memref<16x1xf32, #tpu.memory_space<vmem>>, vector<16x1xf32>
    %c0_6 = arith.constant 0 : index
    %c0_7 = arith.constant 0 : index
    %8 = vector.load %arg4[%c0_6, %c0_7] : memref<1x32xf32, #tpu.memory_space<vmem>>, vector<1x32xf32>
    %9 = vector.broadcast %8 : vector<1x32xf32> to vector<16x32xf32>
    %10 = arith.mulf %6, %9 : vector<16x32xf32>
    %cst_8 = arith.constant dense<0.000000e+00> : vector<16xf32>
    %11 = vector.multi_reduction <add>, %10, %cst_8 [1] : vector<16x32xf32> to vector<16xf32>
    %12 = vector.shape_cast %11 : vector<16xf32> to vector<16x1xf32>
    %13 = arith.addf %7, %12 : vector<16x1xf32>
    %c0_9 = arith.constant 0 : index
    %c0_10 = arith.constant 0 : index
    %14 = vector.load %arg5[%c0_9, %c0_10] : memref<16x1xf32, #tpu.memory_space<vmem>>, vector<16x1xf32>
    tpu.vector_store %arg5[%c0_9, %c0_10], %13 {strides = array<i32>} : memref<16x1xf32, #tpu.memory_space<vmem>>, vector<16x1xf32>,
    return
  }
  func.func @transform_0(%arg0: i32, %arg1: i32) -> (i32, i32) {
    %c0_i32 = arith.constant 0 : i32
    %c0_i32_0 = arith.constant 0 : i32
    return %arg0, %c0_i32 : i32, i32
  }
  func.func @transform_1(%arg0: i32, %arg1: i32) -> (i32, i32) {
    %c0_i32 = arith.constant 0 : i32
    %c0_i32_0 = arith.constant 0 : i32
    return %c0_i32, %arg1 : i32, i32
  }
  func.func @transform_2(%arg0: i32, %arg1: i32) -> (i32, i32) {
    %c0_i32 = arith.constant 0 : i32
    %c0_i32_0 = arith.constant 0 : i32
    return %c0_i32, %arg1 : i32, i32
  }
  func.func @transform_3(%arg0: i32, %arg1: i32) -> (i32, i32) {
    %c0_i32 = arith.constant 0 : i32
    %c0_i32_0 = arith.constant 0 : i32
    return %arg0, %c0_i32 : i32, i32
  }
}

module attributes {stable_mosaic.version = 11 : i64} {
  func.func @_rffhs_kernel_reduce(%arg0: i32, %arg1: i32, %arg2: memref<16x9xf32, #tpu.memory_space<vmem>>, %arg3: memref<9x32xf32, #tpu.memory_space<vmem>>, %arg4: memref<1x32xf32, #tpu.memory_space<vmem>>, %arg5: memref<16x1xf32, #tpu.memory_space<vmem>>) attributes {dimension_semantics = [#tpu.dimension_semantics<parallel>, #tpu.dimension_semantics<arbitrary>], iteration_bounds = array<i64: 5, 1>, scalar_prefetch = 0 : i64, scratch_operands = 0 : i64, tpu.core_type = #tpu.core_type<tc>, window_params = [{transform_indices = @transform_0, window_bounds = array<i64: 16, 9>}, {transform_indices = @transform_1, window_bounds = array<i64: 9, 32>}, {transform_indices = @transform_2, window_bounds = array<i64: 1, 32>}, {transform_indices = @transform_3, window_bounds = array<i64: 16, 1>}]} {
    %c0_i32 = arith.constant 0 : i32
    %0 = arith.cmpi eq, %arg1, %c0_i32 : i32
    %1 = arith.extui %0 : i1 to i32
    %c0_i32_0 = arith.constant 0 : i32
    %2 = arith.cmpi ne, %1, %c0_i32_0 : i32
    scf.if %2 {
      %cst_11 = arith.constant 0.000000e+00 : f32
      %15 = vector.broadcast %cst_11 : f32 to vector<16x1xf32>
      %c0_12 = arith.constant 0 : index
      %c0_13 = arith.constant 0 : index
      %16 = vector.load %arg5[%c0_12, %c0_13] : memref<16x1xf32, #tpu.memory_space<vmem>>, vector<16x1xf32>
      tpu.vector_store %arg5[%c0_12, %c0_13], %15 {strides = array<i32>} : memref<16x1xf32, #tpu.memory_space<vmem>>, vector<16x1xf32>,
    } else {
    }
    %c0 = arith.constant 0 : index
    %c0_1 = arith.constant 0 : index
    %3 = vector.load %arg2[%c0, %c0_1] : memref<16x9xf32, #tpu.memory_space<vmem>>, vector<16x9xf32>
    %c0_2 = arith.constant 0 : index
    %c0_3 = arith.constant 0 : index
    %4 = vector.load %arg3[%c0_2, %c0_3] : memref<9x32xf32, #tpu.memory_space<vmem>>, vector<9x32xf32>
    %cst = arith.constant dense<0.000000e+00> : vector<16x32xf32>
    %5 = tpu.matmul %3, %4, %cst {dimension_numbers = #tpu.dot_dimension_numbers<[1], [0], [0], [1], [0, 0, 1, 1], [], []>} : vector<16x9xf32>, vector<9x32xf32>, vector<16x32xf32> -> vector<16x32xf32>
    %6 = math.cos %5 : vector<16x32xf32>
    %c0_4 = arith.constant 0 : index
    %c0_5 = arith.constant 0 : index
    %7 = vector.load %arg5[%c0_4, %c0_5] : memref<16x1xf32, #tpu.memory_space<vmem>>, vector<16x1xf32>
    %c0_6 = arith.constant 0 : index
    %c0_7 = arith.constant 0 : index
    %8 = vector.load %arg4[%c0_6, %c0_7] : memref<1x32xf32, #tpu.memory_space<vmem>>, vector<1x32xf32>
    %9 = vector.broadcast %8 : vector<1x32xf32> to vector<16x32xf32>
    %10 = arith.mulf %6, %9 : vector<16x32xf32>
    %cst_8 = arith.constant dense<0.000000e+00> : vector<16xf32>
    %11 = vector.multi_reduction <add>, %10, %cst_8 [1] : vector<16x32xf32> to vector<16xf32>
    %12 = vector.shape_cast %11 : vector<16xf32> to vector<16x1xf32>
    %13 = arith.addf %7, %12 : vector<16x1xf32>
    %c0_9 = arith.constant 0 : index
    %c0_10 = arith.constant 0 : index
    %14 = vector.load %arg5[%c0_9, %c0_10] : memref<16x1xf32, #tpu.memory_space<vmem>>, vector<16x1xf32>
    tpu.vector_store %arg5[%c0_9, %c0_10], %13 {strides = array<i32>} : memref<16x1xf32, #tpu.memory_space<vmem>>, vector<16x1xf32>,
    return
  }
  func.func @transform_0(%arg0: i32, %arg1: i32) -> (i32, i32) {
    %c0_i32 = arith.constant 0 : i32
    %c0_i32_0 = arith.constant 0 : i32
    return %arg0, %c0_i32 : i32, i32
  }
  func.func @transform_1(%arg0: i32, %arg1: i32) -> (i32, i32) {
    %c0_i32 = arith.constant 0 : i32
    %c0_i32_0 = arith.constant 0 : i32
    return %c0_i32, %arg1 : i32, i32
  }
  func.func @transform_2(%arg0: i32, %arg1: i32) -> (i32, i32) {
    %c0_i32 = arith.constant 0 : i32
    %c0_i32_0 = arith.constant 0 : i32
    return %c0_i32, %arg1 : i32, i32
  }
  func.func @transform_3(%arg0: i32, %arg1: i32) -> (i32, i32) {
    %c0_i32 = arith.constant 0 : i32
    %c0_i32_0 = arith.constant 0 : i32
    return %arg0, %c0_i32 : i32, i32
  }
}

</mosaic_0001>

<bundles_post_ra>
// kernel: tpu_custom_call.1
= control target key start
LH: loop header
LB: loop body
LE: loop exit
PB: predicated region body
PF: predicated region fallthrough
CT: control target
= control target key end

     0   :  { %s1149_s12 = smov 0   ;;  %s1151_s13 = smov 0   ;;  %s1447_s0 = inlined_call_operand.vmem [shape: f32[70,9], index: 0, kind: input, shape index: {}]   ;;  %s1448_s1 = inlined_call_operand.vmem [shape: f32[9,32], index: 1, kind: input, shape index: {}]   ;;  %s1449_s2 = inlined_call_operand.vmem [shape: f32[1,32], index: 2, kind: input, shape index: {}]   ;;  %s1450_s3 = inlined_call_operand.vmem [shape: f32[70,1], index: 3, kind: output, shape index: {}]  }
   0x1   :  { %s1153_s14 = smov 0   ;;  %s1155_s15 = smov 0  }
   0x2   :  { %s1157_s16 = smov 0  }
   0x3 LB: > { %s863_s17 = sadd.s32 4294967295, %s1087_s16   ;;  %s25_s18 = sadd.s32 1, %s1083_s15  ;;  %s1087_s16 = sphi %s1157_s16, %s13_s16   ;;  %s1083_s15 = sphi %s1155_s15, %s1459_s15   ;;  %s1079_s14 = sphi %s1153_s14, %s1458_s14   ;;  %s1075_s13 = sphi %s1151_s13, %s1457_s13   ;;  %s1071_s12 = sphi %s1149_s12, %s1456_s12  }
   0x4   : > { %p27_p0 = scmp.ge.s32.totalorder %s25_s18, 5  ;;  %s110_s19 = sadd.s32 1, %s1075_s13 }
   0x5   : > { %p120_p1 = scmp.ne.s32.totalorder %s1075_s13, %s1071_s12  ;;  %p121_p2 = scmp.eq.s32.totalorder %s863_s17, 4 }
   0x6   : > { %s1461_s18 = smov (%p27_p0, %s25_s18), 0  ;;  %p869_p4 = scmp.ge.s32.totalorder %s1087_s16, 1 }
   0x7   : > { %p1181_p3 = por %p121_p2, %p120_p1  ;;  %s107_s21 = ssub.s32 %s1083_s15, %s1461_s18 }
   0x8   : > { %p175_p5 = scmp.lt.s32.totalorder %s1087_s16, 6  ;;  %p108_p6 = scmp.eq.s32.totalorder %s107_s21, 0 }
   0xa   : > { %p176_p7 = pnand %p869_p4, %p175_p5 }
   0xb   : > { %s1190_s22 = scalar_select %p108_p6, %s1075_s13, %s110_s19  }
   0xc   : > { %179 = sbr.rel (%p176_p7) target bundleno = 422 (0x1a6), region = 32  ;;  %s1199_s27 = sshll.u32 (!%p176_p7), %s1079_s14, 1 }
   0xd   : > { %p214_p8 = scmp.lt.s32.totalorder (!%p176_p7), %s1199_s27, 8  ;;  %s206_s6 = sand.u32 (!%p176_p7), 1, %s1071_s12  }
   0xe   : > { %s870_s7 = sshll.u32 (!%p176_p7), %s206_s6, 4 }
   0xf   : > { %s1364_s8 = scalar_lea.vmem (!%p176_p7), [#allocation2], %s870_s7  }
  0x11   : > { %v245_v0 = vld [vmem:[%s1448_s1 + $0x8] sm:$0x1]  ;;  %vm253_vm0 = vcmask 1040384   ;;  %v244_v1 = vld [vmem:[%s1448_s1] sm:$0xff]  ;;  %s215_s28 = scalar_select %p214_p8, %s1199_s27, 8  ;;  %vm246_vm1 = vcmask 72704  }
  0x12   : > { %873 = vmatpush.msk.msra.mxu0 %vm253_vm0, %v245_v0  ;;  %902 = vmatpush.msk.msra.mxu1 %vm253_vm0, %v245_v0  ;;  %v1121_v29 = vmov 683565275   ;;  %v1122_v31 = vmov 2475754826   ;;  %v1123_v35 = vmov 2131351028  }
  0x13   : > { %s872_s29 = sshll.u32 %s215_s28, 3  ;;  %v1124_v38 = vmov 2102212464   ;;  %v1125_v41 = vmov 920167782   ;;  %s616_s11 = ssub.s32 (%p1181_p3), 9, %s1199_s27 }
  0x14   : > { %272 = vmatpush.msra.mxu0 %v244_v1  ;;  %903 = vmatpush.msra.mxu1 %v244_v1  ;;  %s217_s5 = scalar_lea.vmem %s1447_s0, %s872_s29  ;;  %v1126_v44 = vmov 1326507024   ;;  %s899_s12 = sshll.u32 (%p1181_p3), %s1079_s14, 4 }
  0x15   : > { %v242_v2 = vld [vmem:[%s217_s5] sm:$0xff]  ;;  %v243_v3 = vld [vmem:[%s217_s5 + $0x8] sm:$0xff]  ;;  %p617_p9 = scmp.lt.s32.totalorder (%p1181_p3), %s616_s11, 2  ;;  %s1408_s21 = scalar_lea.vmem (%p1181_p3), %s1450_s3, %s899_s12  }
  0x16   : > { %874 = vmatmul.msk.f32.vlgmr.msra.gmra.mxu0 %vm246_vm1, %v242_v2  ;;  %875 = vmatmul.msk.f32.vlgmr.msra.gmra.mxu1 %vm246_vm1, %v243_v3 }
  0x93   : > { %v1206_v4 = vpop.f32.mrf.mxu0  ;;  %v1208_v5 = vpop.f32.mrf.mxu1 }
  0x94   : > { %v280_v6 = vand.u32 2147483647, %v1206_v4  ;;  %v283_v7 = vand.u32 2139095040, %v1206_v4  ;;  %v434_v8 = vand.u32 2147483647, %v1208_v5  ;;  %v437_v9 = vand.u32 2139095040, %v1208_v5 }
  0x96   : > { %v284_v10 = vshrl.u32 %v283_v7, 23  ;;  %v287_v11 = vand.u32 8388607, %v280_v6  ;;  %v438_v12 = vshrl.u32 %v437_v9, 23  ;;  %v441_v15 = vand.u32 8388607, %v434_v8 }
  0x98   : > { %v876_v13 = vadd.s32 4294967169, %v284_v10  ;;  %v288_v14 = vor.u32 8388608, %v287_v11  ;;  %v879_v16 = vadd.s32 4294967169, %v438_v12  ;;  %v442_v20 = vor.u32 8388608, %v441_v15 }
  0x9a   : > { %v290_v17 = vadd.s32 1, %v876_v13  ;;  %v444_v18 = vadd.s32 1, %v879_v16  ;;  %v1218_v19 = vshll.u32 %v288_v14, 8  ;;  %v1225_v27 = vshll.u32 %v442_v20, 8 }
  0x9c   : > { %vm291_vm2 = vcmp.gt.s32.totalorder %v290_v17, 0  ;;  %vm445_vm3 = vcmp.gt.s32.totalorder %v444_v18, 0  ;;  %v1221_v25 = vand.u32 65535, %v1218_v19  ;;  %v330_v33 = vshrl.u32 %v1218_v19, 16 }
  0x9d   : > { %v292_v21 = vsel %vm291_vm2, %v290_v17, 0  ;;  %v446_v23 = vsel %vm445_vm3, %v444_v18, 0 }
  0x9e   : > { %v294_v22 = vand.u32 31, %v292_v21  ;;  %v1223_v26 = vand.u32 31, %v446_v23  ;;  %v1227_v28 = vshrl.u32 %v292_v21, 5  ;;  %v1263_v12 = vshrl.u32 %v446_v23, 5 }
  0xa0   : > { %v295_v24 = vsub.s32 32, %v294_v22  ;;  %v297_v30 = vshll.u32 %v1121_v29, %v294_v22  ;;  %v300_v32 = vshll.u32 %v1122_v31, %v294_v22  ;;  %v303_v37 = vshll.u32 %v1123_v35, %v294_v22 }
  0xa1   : > { %v306_v40 = vshll.u32 %v1124_v38, %v294_v22  ;;  %v309_v43 = vshll.u32 %v1125_v41, %v294_v22  ;;  %v1235_v49 = vsub.s32 32, %v1223_v26  ;;  %vm312_vm4 = vcmp.lt.s32.totalorder %v1227_v28, 1 }
  0xa2   : > { %v298_v34 = vshrl.u32 %v1122_v31, %v295_v24  ;;  %v301_v36 = vshrl.u32 %v1123_v35, %v295_v24  ;;  %v304_v39 = vshrl.u32 %v1124_v38, %v295_v24  ;;  %v307_v42 = vshrl.u32 %v1125_v41, %v295_v24 }
  0xa3   : > { %v310_v45 = vshrl.u32 %v1126_v44, %v295_v24  ;;  %vm313_vm5 = vcmp.lt.s32.totalorder %v1227_v28, 2  ;;  %vm314_vm6 = vcmp.lt.s32.totalorder %v1227_v28, 3  ;;  %vm315_vm7 = vcmp.lt.s32.totalorder %v1227_v28, 4 }
  0xa4   : > { %v299_v46 = vor.u32 %v298_v34, %v297_v30  ;;  %v302_v47 = vor.u32 %v301_v36, %v300_v32  ;;  %v305_v48 = vor.u32 %v304_v39, %v303_v37  ;;  %v308_v50 = vor.u32 %v307_v42, %v306_v40 }
  0xa5   : > { %v311_v51 = vor.u32 %v310_v45, %v309_v43  ;;  %v451_v56 = vshll.u32 %v1121_v29, %v1223_v26  ;;  %v454_v57 = vshll.u32 %v1122_v31, %v1223_v26  ;;  %v452_v61 = vshrl.u32 %v1122_v31, %v1235_v49 }
  0xa6   : > { %v320_v52 = vsel %vm312_vm4, %v299_v46, %v302_v47  ;;  %v324_v53 = vsel %vm312_vm4, %v302_v47, %v305_v48  ;;  %v321_v54 = vsel %vm315_vm7, %v308_v50, 920167782  ;;  %v317_v58 = vsel %vm315_vm7, %v305_v48, 2102212464 }
  0xa7   : > { %v325_v55 = vsel %vm315_vm7, %v311_v51, 1326507024  ;;  %v322_v59 = vsel %vm314_vm6, %v305_v48, %v321_v54  ;;  %v296_v62 = vshrl.u32 %v1121_v29, %v295_v24  ;;  %v455_v1 = vshrl.u32 %v1123_v35, %v1235_v49 }
  0xa8   : > { %v326_v60 = vsel %vm314_vm6, %v308_v50, %v325_v55  ;;  %v323_v63 = vsel %vm313_vm5, %v320_v52, %v322_v59  ;;  %v318_v11 = vsel %vm314_vm6, %v302_v47, %v317_v58  ;;  %v1265_v13 = vor.u32 %v452_v61, %v451_v56 }
  0xa9   : > { %v327_v0 = vsel %vm313_vm5, %v324_v53, %v326_v60  ;;  %v353_v7 = vand.u32 65535, %v323_v63  ;;  %v354_v9 = vshrl.u32 %v323_v63, 16  ;;  %v316_v10 = vsel %vm312_vm4, %v296_v62, %v299_v46 }
  0xaa   : > { %v331_v2 = vand.u32 65535, %v327_v0  ;;  %v332_v3 = vshrl.u32 %v327_v0, 16  ;;  %v1268_v16 = vor.u32 %v455_v1, %v454_v57  ;;  %v457_v17 = vshll.u32 %v1123_v35, %v1223_v26 }
  0xab   : > { %v356_v20 = vmul.u32 %v354_v9, %v1221_v25  ;;  %v357_v21 = vmul.u32 %v353_v7, %v330_v33  ;;  %v458_v22 = vshrl.u32 %v1124_v38, %v1235_v49  ;;  %v355_v23 = vmul.u32 %v353_v7, %v1221_v25 }
  0xac   : > { %v334_v14 = vmul.u32 %v332_v3, %v1221_v25  ;;  %v335_v15 = vmul.u32 %v331_v2, %v330_v33  ;;  %v333_v18 = vmul.u32 %v331_v2, %v1221_v25  ;;  %v336_v24 = vmul.u32 %v332_v3, %v330_v33 }
  0xad   : > { %v358_v31 = vmul.u32 %v354_v9, %v330_v33  ;;  %v359_v37 = vshll.u32 %v356_v20, 16  ;;  %v361_v40 = vshll.u32 %v357_v21, 16  ;;  %v460_v35 = vshll.u32 %v1124_v38, %v1223_v26 }
  0xae   : > { %v337_v30 = vshll.u32 %v334_v14, 16  ;;  %v338_v32 = vshrl.u32 %v334_v14, 16  ;;  %v339_v34 = vshll.u32 %v335_v15, 16  ;;  %v340_v36 = vshrl.u32 %v335_v15, 16 }
  0xaf   : > { %v1127_v42 = vmov 0   ;;  %vm363_vm9 = vc.u32 %v355_v23, %v359_v37  ;;  %v365_v45 = vadd.s32 %v359_v37, %v355_v23  ;;  %v461_v46 = vshrl.u32 %v1125_v41, %v1235_v49 }
  0xb0   : > { %vm341_vm8 = vc.u32 %v333_v18, %v337_v30  ;;  %v343_v39 = vadd.s32 %v337_v30, %v333_v18  ;;  %v364_v25 = vsel %vm363_vm9, 1, %v1127_v42  ;;  %v463_v33 = vshll.u32 %v1125_v41, %v1223_v26 }
  0xb1   : > { %v342_v43 = vsel %vm341_vm8, 1, %v1127_v42  ;;  %v366_v50 = vadd.s32 %v364_v25, %v358_v31  ;;  %vm367_vm11 = vc.u32 %v365_v45, %v361_v40  ;;  %v459_v38 = vor.u32 %v458_v22, %v457_v17 }
  0xb2   : > { %v344_v47 = vadd.s32 %v342_v43, %v336_v24  ;;  %vm345_vm10 = vc.u32 %v343_v39, %v339_v34  ;;  %v368_v52 = vsel %vm367_vm11, 1, %v1127_v42  ;;  %v462_v53 = vor.u32 %v461_v46, %v460_v35 }
  0xb3   : > { %v346_v48 = vsel %vm345_vm10, 1, %v1127_v42  ;;  %v464_v54 = vshrl.u32 %v1126_v44, %v1235_v49  ;;  %v360_v55 = vshrl.u32 %v356_v20, 16  ;;  %v370_v56 = vadd.s32 %v368_v52, %v366_v50 }
  0xb4   : > { %v348_v51 = vadd.s32 %v346_v48, %v344_v47  ;;  %vm466_vm12 = vcmp.lt.s32.totalorder %v1263_v12, 1  ;;  %vm468_vm13 = vcmp.lt.s32.totalorder %v1263_v12, 3  ;;  %vm467_vm14 = vcmp.lt.s32.totalorder %v1263_v12, 2 }
  0xb5   : > { %v465_v26 = vor.u32 %v464_v54, %v463_v33  ;;  %vm469_vm15 = vcmp.lt.s32.totalorder %v1263_v12, 4  ;;  %v362_v41 = vshrl.u32 %v357_v21, 16  ;;  %v371_v58 = vadd.s32 %v370_v56, %v360_v55 }
  0xb6   : > { %v349_v57 = vadd.s32 %v348_v51, %v338_v32  ;;  %v474_v59 = vsel %vm466_vm12, %v1265_v13, %v1268_v16  ;;  %v475_v44 = vsel %vm469_vm15, %v462_v53, 920167782  ;;  %v1298_v61 = vadd.s32 %v365_v45, %v361_v40 }
  0xb7   : > { %v476_v62 = vsel %vm468_vm13, %v459_v38, %v475_v44  ;;  %v478_v63 = vsel %vm466_vm12, %v1268_v16, %v459_v38  ;;  %v319_v0 = vsel %vm313_vm5, %v316_v10, %v318_v11  ;;  %v372_v1 = vadd.s32 %v371_v58, %v362_v41 }
  0xb8   : > { %v1296_v60 = vadd.s32 %v349_v57, %v340_v36  ;;  %v477_v2 = vsel %vm467_vm14, %v474_v59, %v476_v62  ;;  %v479_v3 = vsel %vm469_vm15, %v465_v26, 1326507024  ;;  %v483_v9 = vand.u32 65535, %v1225_v27 }
  0xb9   : > { %v480_v7 = vsel %vm468_vm13, %v462_v53, %v479_v3  ;;  %v507_v14 = vand.u32 65535, %v477_v2  ;;  %v376_v15 = vadd.s32 1, %v372_v1  ;;  %v484_v10 = vshrl.u32 %v1225_v27, 16 }
  0xba   : > { %vm375_vm0 = vc.u32 %v1296_v60, %v1298_v61  ;;  %v481_v28 = vsel %vm467_vm14, %v478_v63, %v480_v7  ;;  %v508_v11 = vshrl.u32 %v477_v2, 16  ;;  %v373_v17 = vmul.u32 %v1218_v19, %v319_v0 }
  0xbb   : > { %v485_v18 = vand.u32 65535, %v481_v28  ;;  %v486_v20 = vshrl.u32 %v481_v28, 16  ;;  %v377_v21 = vsel %vm375_vm0, %v376_v15, %v372_v1  ;;  %v511_v24 = vmul.u32 %v507_v14, %v484_v10 }
  0xbc   : > { %v510_v22 = vmul.u32 %v508_v11, %v483_v9  ;;  %v378_v30 = vadd.s32 %v377_v21, %v373_v17  ;;  %v509_v32 = vmul.u32 %v507_v14, %v483_v9  ;;  %v512_v34 = vmul.u32 %v508_v11, %v484_v10 }
  0xbd   : > { %v488_v23 = vmul.u32 %v486_v20, %v483_v9  ;;  %v489_v31 = vmul.u32 %v485_v18, %v484_v10  ;;  %v487_v39 = vmul.u32 %v485_v18, %v483_v9  ;;  %v490_v40 = vmul.u32 %v486_v20, %v484_v10 }
  0xbe   : > { %v513_v36 = vshll.u32 %v510_v22, 16  ;;  %v379_v37 = vadd.s32 536870912, %v378_v30  ;;  %v515_v45 = vshll.u32 %v511_v24, 16  ;;  %v450_v33 = vshrl.u32 %v1121_v29, %v1235_v49 }
  0xbf   : > { %v491_v35 = vshll.u32 %v488_v23, 16  ;;  %v493_v43 = vshll.u32 %v489_v31, 16  ;;  %v471_v52 = vsel %vm469_vm15, %v459_v38, 2102212464  ;;  %v492_v57 = vshrl.u32 %v488_v23, 16 }
  0xc0   : > { %vm517_vm1 = vc.u32 %v509_v32, %v513_v36  ;;  %v519_v46 = vadd.s32 %v513_v36, %v509_v32  ;;  %v1320_v19 = vshrl.u32 %v379_v37, 30  ;;  %v470_v29 = vsel %vm466_vm12, %v450_v33, %v1265_v13 }
  0xc1   : > { %vm495_vm2 = vc.u32 %v487_v39, %v491_v35  ;;  %v497_v47 = vadd.s32 %v491_v35, %v487_v39  ;;  %v518_v25 = vsel %vm517_vm1, 1, %v1127_v42  ;;  %v472_v49 = vsel %vm468_vm13, %v1268_v16, %v471_v52 }
  0xc2   : > { %v496_v48 = vsel %vm495_vm2, 1, %v1127_v42  ;;  %v520_v50 = vadd.s32 %v518_v25, %v512_v34  ;;  %vm521_vm3 = vc.u32 %v519_v46, %v515_v45  ;;  %v381_v51 = vshll.u32 %v1320_v19, 30 }
  0xc3   : > { %v498_v53 = vadd.s32 %v496_v48, %v490_v40  ;;  %vm499_vm4 = vc.u32 %v497_v47, %v493_v43  ;;  %v522_v55 = vsel %vm521_vm3, 1, %v1127_v42  ;;  %v514_v58 = vshrl.u32 %v510_v22, 16 }
  0xc4   : > { %v500_v54 = vsel %vm499_vm4, 1, %v1127_v42  ;;  %v382_v56 = vsub.s32 %v378_v30, %v381_v51  ;;  %v524_v41 = vadd.s32 %v522_v55, %v520_v50  ;;  %v494_v59 = vshrl.u32 %v489_v31, 16 }
  0xc5   : > { %v502_v26 = vadd.s32 %v500_v54, %v498_v53  ;;  %v516_v62 = vshrl.u32 %v511_v24, 16  ;;  %v523_v1 = vadd.s32 %v519_v46, %v515_v45  ;;  %v473_v3 = vsel %vm467_vm14, %v470_v29, %v472_v49 }
  0xc6   : > { %vm383_vm5 = vcmp.lt.s32.totalorder %v382_v56, 0  ;;  %v384_v38 = vsub.s32 0, %v382_v56  ;;  %v525_v63 = vadd.s32 %v524_v41, %v514_v58  ;;  %v527_v16 = vmul.u32 %v1225_v27, %v473_v3 }
  0xc7   : > { %v503_v44 = vadd.s32 %v502_v26, %v492_v57  ;;  %v374_v10 = vadd.s32 %v1298_v61, %v1296_v60  ;;  %vm282_vm9 = vcmp.lt.s32.totalorder %v1206_v4, 0  ;;  %vm1348_vm10 = vcmp.le.f32.partialorder %v280_v6, 0.7853982 }
  0xc8   : > { %v385_v42 = vsel %vm383_vm5, %v384_v38, %v382_v56  ;;  %v526_v7 = vadd.s32 %v525_v63, %v516_v62  ;;  %v404_v6 = vsub.s32 4, %v1320_v19  ;;  %vm239_vm12 = vcmask 7168  }
  0xc9   : > { %v504_v0 = vadd.s32 %v503_v44, %v494_v59  ;;  %v386_v2 = vclz %v385_v42  ;;  %vm436_vm13 = vcmp.lt.s32.totalorder %v1208_v5, 0  ;;  %vm1373_vm14 = vcmp.le.f32.partialorder %v434_v8, 0.7853982 }
  0xca   : > { %v530_v9 = vadd.s32 1, %v526_v7  ;;  %v405_v29 = vsel %vm282_vm9, %v404_v6, %v1320_v19  ;;  %vm423_vm2 = vweird.f32 %v1206_v4  ;;  %vm596_vm3 = vcmask 261120  }
  0xcb   : > { %vm529_vm6 = vc.u32 %v504_v0, %v523_v1  ;;  %v877_v13 = vadd.s32 4294967294, %v386_v2  ;;  %v528_v33 = vadd.s32 %v523_v1, %v504_v0  ;;  %v407_v44 = vsel %vm1348_vm10, 0, %v405_v29 }
  0xcc   : > { %v531_v14 = vsel %vm529_vm6, %v530_v9, %v526_v7  ;;  %v424_v3 = vand.u32 3, %v407_v44  ;;  %v1128_v9 = vmov 0.0  }
  0xcd   : > { %vm878_vm7 = vcmp.lt.s32.totalorder %v877_v13, 0  ;;  %v532_v28 = vadd.s32 %v531_v14, %v527_v16  ;;  %240 = vst.msk [vmem:[%s1364_s8] sm:$0xff] %vm239_vm12, %v1128_v9 }
  0xce   : > { %v389_v15 = vsel %vm878_vm7, 0, %v877_v13  ;;  %241 = vst.msk [vmem:[%s1364_s8 + $0x8] sm:$0xff] %vm239_vm12, %v1128_v9  ;;  %vm426_vm15 = vcmp.eq.s32.totalorder %v424_v3, 0  ;;  %vm429_vm0 = vcmp.eq.s32.totalorder %v424_v3, 2  ;;  %vm425_vm1 = vcmp.lt.s32.totalorder %v424_v3, 2 }
  0xcf   : > { %v390_v11 = vsub.s32 32, %v389_v15  ;;  %v394_v17 = vsub.s32 4294967266, %v389_v15  ;;  %v533_v18 = vadd.s32 536870912, %v532_v28  ;;  %v391_v20 = vshll.u32 %v382_v56, %v389_v15 }
  0xd0   : > { %vm577_vm7 = vweird.f32 %v1208_v5 }
  0xd1   : > { %v392_v21 = vshrl.u32 %v374_v10, %v390_v11  ;;  %v395_v12 = vadd.s32 127, %v394_v17  ;;  %v1342_v22 = vshrl.u32 %v533_v18, 30  ;;  %v1016_v11 = vld [vmem:[%s1449_s2] ss:$0 sm:$0xff] }
  0xd3   : > { %v393_v24 = vor.u32 %v392_v21, %v391_v20  ;;  %v396_v30 = vshll.u32 %v395_v12, 23  ;;  %v535_v23 = vshll.u32 %v1342_v22, 30 }
  0xd5   : > { %v397_v27 = vor.u32 4788187, %v396_v30  ;;  %v536_v31 = vsub.s32 %v532_v28, %v535_v23  ;;  %v400_v34 = vcvt.s32.f32 %v393_v24  ;;  %v558_v30 = vsub.s32 4, %v1342_v22 }
  0xd7   : > { %v398_v32 = vand.u32 2147483647, %v397_v27  ;;  %vm537_vm8 = vcmp.lt.s32.totalorder %v536_v31, 0  ;;  %v538_v36 = vsub.s32 0, %v536_v31 }
  0xd9   : > { %v401_v37 = vmul.f32 %v400_v34, %v398_v32  ;;  %v539_v60 = vsel %vm537_vm8, %v538_v36, %v536_v31 }
  0xda   : > { %v540_v39 = vclz %v539_v60 }
  0xdb   : > { %v402_v61 = vxor.u32 2147483648, %v401_v37 }
  0xdc   : > { %v880_v43 = vadd.s32 4294967294, %v540_v39 }
  0xdd   : > { %v403_v35 = vsel %vm282_vm9, %v402_v61, %v401_v37  ;;  %v559_v37 = vsel %vm436_vm13, %v558_v30, %v1342_v22 }
  0xde   : > { %v406_v45 = vsel %vm1348_vm10, %v1206_v4, %v403_v35  ;;  %vm881_vm11 = vcmp.lt.s32.totalorder %v880_v43, 0  ;;  %v561_v61 = vsel %vm1373_vm14, 0, %v559_v37 }
  0xdf   : > { %v408_v46 = vmul.f32 %v406_v45, %v406_v45  ;;  %v543_v47 = vsel %vm881_vm11, 0, %v880_v43 }
  0xe0   : > { %v544_v48 = vsub.s32 32, %v543_v47  ;;  %v548_v50 = vsub.s32 4294967266, %v543_v47  ;;  %v545_v53 = vshll.u32 %v536_v31, %v543_v47 }
  0xe1   : > { %v416_v25 = vmul.f32 -0.00019511016, %v408_v46  ;;  %v409_v51 = vmul.f32 -0.001358992, %v408_v46 }
  0xe2   : > { %v546_v54 = vshrl.u32 %v528_v33, %v544_v48  ;;  %v549_v55 = vadd.s32 127, %v548_v50 }
  0xe3   : > { %v417_v52 = vadd.f32 0.008332121, %v416_v25  ;;  %v410_v56 = vadd.f32 0.041655596, %v409_v51 }
  0xe4   : > { %v547_v26 = vor.u32 %v546_v54, %v545_v53  ;;  %v550_v41 = vshll.u32 %v549_v55, 23  ;;  %v589_v55 = vld [vmem:[%s1364_s8 + $0x8] sm:$0xff] }
  0xe5   : > { %v418_v57 = vmul.f32 %v417_v52, %v408_v46  ;;  %v411_v49 = vmul.f32 %v410_v56, %v408_v46  ;;  %v588_v52 = vld [vmem:[%s1364_s8] sm:$0xff] }
  0xe6   : > { %v551_v38 = vor.u32 4788187, %v550_v41  ;;  %v554_v42 = vcvt.s32.f32 %v547_v26 }
  0xe7   : > { %v419_v58 = vadd.f32 -0.16666654, %v418_v57  ;;  %v412_v59 = vadd.f32 -0.4999988, %v411_v49 }
  0xe8   : > { %v552_v63 = vand.u32 2147483647, %v551_v38 }
  0xe9   : > { %v420_v62 = vmul.f32 %v419_v58, %v408_v46  ;;  %v413_v0 = vmul.f32 %v412_v59, %v408_v46 }
  0xea   : > { %v555_v2 = vmul.f32 %v554_v42, %v552_v63 }
  0xeb   : > { %v421_v1 = vadd.f32 1.0, %v420_v62  ;;  %v414_v7 = vadd.f32 1.0, %v413_v0 }
  0xec   : > { %v556_v19 = vxor.u32 2147483648, %v555_v2 }
  0xed   : > { %v422_v13 = vmul.f32 %v421_v1, %v406_v45  ;;  %v430_v16 = vxor.u32 2147483648, %v414_v7  ;;  %v578_v45 = vand.u32 3, %v561_v61 }
  0xee   : > { %v557_v28 = vsel %vm436_vm13, %v556_v19, %v555_v2 }
  0xef   : > { %v427_v14 = vxor.u32 2147483648, %v422_v13  ;;  %v560_v10 = vsel %vm1373_vm14, %v1208_v5, %v557_v28  ;;  %v431_v8 = vsel %vm429_vm0, %v430_v16, %v422_v13  ;;  %vm580_vm4 = vcmp.eq.s32.totalorder %v578_v45, 0 }
  0xf0   : > { %v562_v17 = vmul.f32 %v560_v10, %v560_v10  ;;  %vm583_vm5 = vcmp.eq.s32.totalorder %v578_v45, 2  ;;  %vm579_vm6 = vcmp.lt.s32.totalorder %v578_v45, 2 }
  0xf1   : > { %v428_v18 = vsel %vm426_vm15, %v414_v7, %v427_v14 }
  0xf2   : > { %v432_v20 = vsel %vm425_vm1, %v428_v18, %v431_v8  ;;  %v570_v21 = vmul.f32 -0.00019511016, %v562_v17  ;;  %v563_v24 = vmul.f32 -0.001358992, %v562_v17 }
  0xf3   : > { %v433_v12 = vsel %vm423_vm2, nan, %v432_v20 }
  0xf4   : > { %v594_v23 = vmul.f32 %v1016_v11, %v433_v12  ;;  %v571_v27 = vadd.f32 0.008332121, %v570_v21  ;;  %v564_v31 = vadd.f32 0.041655596, %v563_v24 }
  0xf6   : > { %v597_v32 = vsel %vm596_vm3, %v594_v23, 0.0  ;;  %v572_v34 = vmul.f32 %v571_v27, %v562_v17  ;;  %v565_v36 = vmul.f32 %v564_v31, %v562_v17 }
  0xf7   : > { %598 = vadd.xlane.f32.xlu0 %v597_v32 }
  0xf8   : > { %v573_v4 = vadd.f32 -0.16666654, %v572_v34  ;;  %v566_v60 = vadd.f32 -0.4999988, %v565_v36 }
  0xfa   : > { %v574_v39 = vmul.f32 %v573_v4, %v562_v17  ;;  %v567_v40 = vmul.f32 %v566_v60, %v562_v17 }
  0xfc   : > { %v575_v35 = vadd.f32 1.0, %v574_v39  ;;  %v568_v43 = vadd.f32 1.0, %v567_v40 }
  0xfe   : > { %v576_v46 = vmul.f32 %v575_v35, %v560_v10  ;;  %v584_v47 = vxor.u32 2147483648, %v568_v43 }
 0x100   : > { %v581_v25 = vxor.u32 2147483648, %v576_v46  ;;  %v585_v33 = vsel %vm583_vm5, %v584_v47, %v576_v46 }
 0x102   : > { %v582_v22 = vsel %vm580_vm4, %v568_v43, %v581_v25 }
 0x103   : > { %v586_v48 = vsel %vm579_vm6, %v582_v22, %v585_v33 }
 0x104   : > { %v587_v50 = vsel %vm577_vm7, nan, %v586_v48 }
 0x105   : > { %v595_v6 = vmul.f32 %v1016_v11, %v587_v50 }
 0x107   : > { %v600_v51 = vsel %vm596_vm3, %v595_v6, 0.0 }
 0x108   : > { %601 = vadd.xlane.f32.xlu0 %v600_v51 }
 0x16a   : > { %v599_v53 = vpop.xlane.xlu0 %598 }
 0x16b   : > { %v603_v54 = vadd.f32 %v599_v53, %v588_v52 }
 0x16d   : > { %606 = vst.msk [vmem:[%s1364_s8] sm:$0xff] %vm239_vm12, %v603_v54 }
 0x17a   : > { %614 = sbr.rel (!%p1181_p3) target bundleno = 422 (0x1a6), region = 40 }
 0x17b   : > { %v602_v56 = vpop.xlane.xlu0 %601 }
 0x17c   : > { %v604_v57 = vadd.f32 %v602_v56, %v589_v55 }
 0x17e   : > { %607 = vst.msk [vmem:[%s1364_s8 + $0x8] sm:$0xff] %vm239_vm12, %v604_v57 }
 0x17f   : > { %s1463_s11 = smov (!%p617_p9, %s616_s11), 2 }
 0x180   : > { %s884_s23 = sshll.u32 %s1463_s11, 3 }
 0x181   : > { %p887_p10 = scmp.eq.s32.totalorder %s884_s23, 0 }
 0x182   : > { %s1414_s24 = sshrl.u32 (!%p887_p10), %s1463_s11, 1 }
 0x183   : > { %625 = sbr.rel (%p887_p10) target bundleno = 422 (0x1a6), region = 44  ;;  %p888_p11 = scmp.le.s32.totalorder (!%p887_p10), %s1414_s24, 0 }
 0x188   : > { %793 = sbr.rel (%p888_p11) target bundleno = 405 (0x195), region = 126  ;;  %s1089_s14 = smov (!%p888_p11), %s1408_s21  }
 0x189   : > { %s1093_s20 = smov (!%p888_p11), %s1364_s8   ;;  %s1097_s25 = smov (!%p888_p11), 0  }
 0x18a   : > { %s1101_s26 = smov (!%p888_p11), 0  }
 0x18d LB: >> { %v690_v5 = vld [vmem:[%s1095_s20] sm:$0xff]  ;;  %v692_v26 = vld [vmem:[%s1095_s20 + $0x8] sm:$0xff]  ;;  %s694_s27 = sadd.s32 1, %s1099_s25  ;;  %s684_s26 = sadd.s32 1, %s1103_s26   ;;  %s1103_s26 = sphi %s1101_s26, %s684_s26   ;;  %s1099_s25 = sphi %s1097_s25, %s1098_s25   ;;  %s1095_s20 = sphi %s1093_s20, %s699_s20   ;;  %s1091_s14 = sphi %s1089_s14, %s700_s14  }
 0x18e   : >> { %691 = vst [vmem:[%s1091_s14] sm:$0xff] %v690_v5  ;;  %p695_p12 = scmp.ge.s32.totalorder %s694_s27, %s1414_s24  ;;  %p683_p13 = scmp.ge.s32.totalorder %s684_s26, %s1414_s24 }
 0x18f   : >> { %693 = vst [vmem:[%s1091_s14 + $0x8] sm:$0xff] %v692_v26 }
 0x190   : >> { %s1465_s27 = smov (%p695_p12, %s694_s27), 0  ;;  %686 = sbr.rel (!%p683_p13) target bundleno = 397 (0x18d), region = 132 }
 0x191   : >> { %s889_s28 = sshll.u32 %s1465_s27, 4  ;;  %s1098_s25 = smov %s1465_s27  }
 0x192   : >> { %s699_s20 = scalar_lea.vmem %s1364_s8, %s889_s28 [#allocation2]   ;;  %s700_s14 = scalar_lea.vmem %s1408_s21, %s889_s28  }
 0x195 PF: > { %s1424_s29 = sand.u32 1, %s1463_s11   ;;  %s900_s30 = sshll.u32 %s1414_s24, 4 }
 0x196   : > { %s705_s4 = scalar_lea.vmem %s1364_s8, %s900_s30 [#allocation2]   ;;  %s707_s5 = scalar_lea.vmem %s1408_s21, %s900_s30  }
 0x197   : > { %p894_p0 = scmp.le.s32.totalorder %s1424_s29, 0 }
 0x198   : > { %s1105_s6 = smov (!%p894_p0), %s707_s5   ;;  %s1109_s7 = smov (!%p894_p0), %s705_s4  }
 0x199   : > { %807 = sbr.rel (%p894_p0) target bundleno = 422 (0x1a6), region = 137  ;;  %s1113_s9 = smov (!%p894_p0), 0  }
 0x19a   : > { %s1117_s10 = smov (!%p894_p0), 0  }
 0x19e LB: >> { %v717_v41 = vld [vmem:[%s1111_s7] sm:$0xff]  ;;  %s719_s11 = sadd.s32 1, %s1115_s9  ;;  %s711_s10 = sadd.s32 1, %s1119_s10   ;;  %s1119_s10 = sphi %s1117_s10, %s711_s10   ;;  %s1115_s9 = sphi %s1113_s9, %s1114_s9   ;;  %s1111_s7 = sphi %s1109_s7, %s724_s7   ;;  %s1107_s6 = sphi %s1105_s6, %s725_s6  }
 0x19f   : >> { %718 = vst [vmem:[%s1107_s6] sm:$0xff] %v717_v41  ;;  %p720_p1 = scmp.ge.s32.totalorder %s719_s11, %s1424_s29  ;;  %p710_p2 = scmp.ge.s32.totalorder %s711_s10, %s1424_s29 }
 0x1a1   : >> { %s1467_s11 = smov (%p720_p1, %s719_s11), 0  ;;  %713 = sbr.rel (!%p710_p2) target bundleno = 414 (0x19e), region = 143 }
 0x1a2   : >> { %s895_s8 = sshll.u32 %s1467_s11, 3  ;;  %s1114_s9 = smov %s1467_s11  }
 0x1a3   : >> { %s724_s7 = scalar_lea.vmem %s705_s4, %s895_s8 [#allocation2]   ;;  %s725_s6 = scalar_lea.vmem %s707_s5, %s895_s8  }
 0x1a6 PF: > { %s13_s16 = sadd.s32 1, %s1087_s16   ;;  %s1456_s12 = smov %s1075_s13 }
 0x1a7   : > { %p10_p3 = scmp.ge.s32.totalorder %s13_s16, 7   ;;  %s1457_s13 = smov %s1190_s22 }
 0x1a8   : > { %s1458_s14 = smov %s1083_s15  ;;  %s1459_s15 = smov %s1461_s18 }
 0x1a9   :  { %12 = sbr.rel (!%p10_p3) target bundleno = 3 (0x3), region = 154 }

// kernel: tpu_custom_call.1
= control target key start
LH: loop header
LB: loop body
LE: loop exit
PB: predicated region body
PF: predicated region fallthrough
CT: control target
= control target key end

     0   :  { %s1149_s12 = smov 0   ;;  %s1151_s13 = smov 0   ;;  %s1447_s0 = inlined_call_operand.vmem [shape: f32[70,9], index: 0, kind: input, shape index: {}]   ;;  %s1448_s1 = inlined_call_operand.vmem [shape: f32[9,32], index: 1, kind: input, shape index: {}]   ;;  %s1449_s2 = inlined_call_operand.vmem [shape: f32[1,32], index: 2, kind: input, shape index: {}]   ;;  %s1450_s3 = inlined_call_operand.vmem [shape: f32[70,1], index: 3, kind: output, shape index: {}]  }
   0x1   :  { %s1153_s14 = smov 0   ;;  %s1155_s15 = smov 0  }
   0x2   :  { %s1157_s16 = smov 0  }
   0x3 LB: > { %s863_s17 = sadd.s32 4294967295, %s1087_s16   ;;  %s25_s18 = sadd.s32 1, %s1083_s15  ;;  %s1087_s16 = sphi %s1157_s16, %s13_s16   ;;  %s1083_s15 = sphi %s1155_s15, %s1459_s15   ;;  %s1079_s14 = sphi %s1153_s14, %s1458_s14   ;;  %s1075_s13 = sphi %s1151_s13, %s1457_s13   ;;  %s1071_s12 = sphi %s1149_s12, %s1456_s12  }
   0x4   : > { %p27_p0 = scmp.ge.s32.totalorder %s25_s18, 5  ;;  %s110_s19 = sadd.s32 1, %s1075_s13 }
   0x5   : > { %p120_p1 = scmp.ne.s32.totalorder %s1075_s13, %s1071_s12  ;;  %p121_p2 = scmp.eq.s32.totalorder %s863_s17, 4 }
   0x6   : > { %s1461_s18 = smov (%p27_p0, %s25_s18), 0  ;;  %p869_p4 = scmp.ge.s32.totalorder %s1087_s16, 1 }
   0x7   : > { %p1181_p3 = por %p121_p2, %p120_p1  ;;  %s107_s21 = ssub.s32 %s1083_s15, %s1461_s18 }
   0x8   : > { %p175_p5 = scmp.lt.s32.totalorder %s1087_s16, 6  ;;  %p108_p6 = scmp.eq.s32.totalorder %s107_s21, 0 }
   0xa   : > { %p176_p7 = pnand %p869_p4, %p175_p5 }
   0xb   : > { %s1190_s22 = scalar_select %p108_p6, %s1075_s13, %s110_s19  }
   0xc   : > { %179 = sbr.rel (%p176_p7) target bundleno = 422 (0x1a6), region = 32  ;;  %s1199_s27 = sshll.u32 (!%p176_p7), %s1079_s14, 1 }
   0xd   : > { %p214_p8 = scmp.lt.s32.totalorder (!%p176_p7), %s1199_s27, 8  ;;  %s206_s6 = sand.u32 (!%p176_p7), 1, %s1071_s12  }
   0xe   : > { %s870_s7 = sshll.u32 (!%p176_p7), %s206_s6, 4 }
   0xf   : > { %s1364_s8 = scalar_lea.vmem (!%p176_p7), [#allocation2], %s870_s7  }
  0x11   : > { %v245_v0 = vld [vmem:[%s1448_s1 + $0x8] sm:$0x1]  ;;  %vm253_vm0 = vcmask 1040384   ;;  %v244_v1 = vld [vmem:[%s1448_s1] sm:$0xff]  ;;  %s215_s28 = scalar_select %p214_p8, %s1199_s27, 8  ;;  %vm246_vm1 = vcmask 72704  }
  0x12   : > { %873 = vmatpush.msk.msra.mxu0 %vm253_vm0, %v245_v0  ;;  %902 = vmatpush.msk.msra.mxu1 %vm253_vm0, %v245_v0  ;;  %v1121_v29 = vmov 683565275   ;;  %v1122_v31 = vmov 2475754826   ;;  %v1123_v35 = vmov 2131351028  }
  0x13   : > { %s872_s29 = sshll.u32 %s215_s28, 3  ;;  %v1124_v38 = vmov 2102212464   ;;  %v1125_v41 = vmov 920167782   ;;  %s616_s11 = ssub.s32 (%p1181_p3), 9, %s1199_s27 }
  0x14   : > { %272 = vmatpush.msra.mxu0 %v244_v1  ;;  %903 = vmatpush.msra.mxu1 %v244_v1  ;;  %s217_s5 = scalar_lea.vmem %s1447_s0, %s872_s29  ;;  %v1126_v44 = vmov 1326507024   ;;  %s899_s12 = sshll.u32 (%p1181_p3), %s1079_s14, 4 }
  0x15   : > { %v242_v2 = vld [vmem:[%s217_s5] sm:$0xff]  ;;  %v243_v3 = vld [vmem:[%s217_s5 + $0x8] sm:$0xff]  ;;  %p617_p9 = scmp.lt.s32.totalorder (%p1181_p3), %s616_s11, 2  ;;  %s1408_s21 = scalar_lea.vmem (%p1181_p3), %s1450_s3, %s899_s12  }
  0x16   : > { %874 = vmatmul.msk.f32.vlgmr.msra.gmra.mxu0 %vm246_vm1, %v242_v2  ;;  %875 = vmatmul.msk.f32.vlgmr.msra.gmra.mxu1 %vm246_vm1, %v243_v3 }
  0x93   : > { %v1206_v4 = vpop.f32.mrf.mxu0  ;;  %v1208_v5 = vpop.f32.mrf.mxu1 }
  0x94   : > { %v280_v6 = vand.u32 2147483647, %v1206_v4  ;;  %v283_v7 = vand.u32 2139095040, %v1206_v4  ;;  %v434_v8 = vand.u32 2147483647, %v1208_v5  ;;  %v437_v9 = vand.u32 2139095040, %v1208_v5 }
  0x96   : > { %v284_v10 = vshrl.u32 %v283_v7, 23  ;;  %v287_v11 = vand.u32 8388607, %v280_v6  ;;  %v438_v12 = vshrl.u32 %v437_v9, 23  ;;  %v441_v15 = vand.u32 8388607, %v434_v8 }
  0x98   : > { %v876_v13 = vadd.s32 4294967169, %v284_v10  ;;  %v288_v14 = vor.u32 8388608, %v287_v11  ;;  %v879_v16 = vadd.s32 4294967169, %v438_v12  ;;  %v442_v20 = vor.u32 8388608, %v441_v15 }
  0x9a   : > { %v290_v17 = vadd.s32 1, %v876_v13  ;;  %v444_v18 = vadd.s32 1, %v879_v16  ;;  %v1218_v19 = vshll.u32 %v288_v14, 8  ;;  %v1225_v27 = vshll.u32 %v442_v20, 8 }
  0x9c   : > { %vm291_vm2 = vcmp.gt.s32.totalorder %v290_v17, 0  ;;  %vm445_vm3 = vcmp.gt.s32.totalorder %v444_v18, 0  ;;  %v1221_v25 = vand.u32 65535, %v1218_v19  ;;  %v330_v33 = vshrl.u32 %v1218_v19, 16 }
  0x9d   : > { %v292_v21 = vsel %vm291_vm2, %v290_v17, 0  ;;  %v446_v23 = vsel %vm445_vm3, %v444_v18, 0 }
  0x9e   : > { %v294_v22 = vand.u32 31, %v292_v21  ;;  %v1223_v26 = vand.u32 31, %v446_v23  ;;  %v1227_v28 = vshrl.u32 %v292_v21, 5  ;;  %v1263_v12 = vshrl.u32 %v446_v23, 5 }
  0xa0   : > { %v295_v24 = vsub.s32 32, %v294_v22  ;;  %v297_v30 = vshll.u32 %v1121_v29, %v294_v22  ;;  %v300_v32 = vshll.u32 %v1122_v31, %v294_v22  ;;  %v303_v37 = vshll.u32 %v1123_v35, %v294_v22 }
  0xa1   : > { %v306_v40 = vshll.u32 %v1124_v38, %v294_v22  ;;  %v309_v43 = vshll.u32 %v1125_v41, %v294_v22  ;;  %v1235_v49 = vsub.s32 32, %v1223_v26  ;;  %vm312_vm4 = vcmp.lt.s32.totalorder %v1227_v28, 1 }
  0xa2   : > { %v298_v34 = vshrl.u32 %v1122_v31, %v295_v24  ;;  %v301_v36 = vshrl.u32 %v1123_v35, %v295_v24  ;;  %v304_v39 = vshrl.u32 %v1124_v38, %v295_v24  ;;  %v307_v42 = vshrl.u32 %v1125_v41, %v295_v24 }
  0xa3   : > { %v310_v45 = vshrl.u32 %v1126_v44, %v295_v24  ;;  %vm313_vm5 = vcmp.lt.s32.totalorder %v1227_v28, 2  ;;  %vm314_vm6 = vcmp.lt.s32.totalorder %v1227_v28, 3  ;;  %vm315_vm7 = vcmp.lt.s32.totalorder %v1227_v28, 4 }
  0xa4   : > { %v299_v46 = vor.u32 %v298_v34, %v297_v30  ;;  %v302_v47 = vor.u32 %v301_v36, %v300_v32  ;;  %v305_v48 = vor.u32 %v304_v39, %v303_v37  ;;  %v308_v50 = vor.u32 %v307_v42, %v306_v40 }
  0xa5   : > { %v311_v51 = vor.u32 %v310_v45, %v309_v43  ;;  %v451_v56 = vshll.u32 %v1121_v29, %v1223_v26  ;;  %v454_v57 = vshll.u32 %v1122_v31, %v1223_v26  ;;  %v452_v61 = vshrl.u32 %v1122_v31, %v1235_v49 }
  0xa6   : > { %v320_v52 = vsel %vm312_vm4, %v299_v46, %v302_v47  ;;  %v324_v53 = vsel %vm312_vm4, %v302_v47, %v305_v48  ;;  %v321_v54 = vsel %vm315_vm7, %v308_v50, 920167782  ;;  %v317_v58 = vsel %vm315_vm7, %v305_v48, 2102212464 }
  0xa7   : > { %v325_v55 = vsel %vm315_vm7, %v311_v51, 1326507024  ;;  %v322_v59 = vsel %vm314_vm6, %v305_v48, %v321_v54  ;;  %v296_v62 = vshrl.u32 %v1121_v29, %v295_v24  ;;  %v455_v1 = vshrl.u32 %v1123_v35, %v1235_v49 }
  0xa8   : > { %v326_v60 = vsel %vm314_vm6, %v308_v50, %v325_v55  ;;  %v323_v63 = vsel %vm313_vm5, %v320_v52, %v322_v59  ;;  %v318_v11 = vsel %vm314_vm6, %v302_v47, %v317_v58  ;;  %v1265_v13 = vor.u32 %v452_v61, %v451_v56 }
  0xa9   : > { %v327_v0 = vsel %vm313_vm5, %v324_v53, %v326_v60  ;;  %v353_v7 = vand.u32 65535, %v323_v63  ;;  %v354_v9 = vshrl.u32 %v323_v63, 16  ;;  %v316_v10 = vsel %vm312_vm4, %v296_v62, %v299_v46 }
  0xaa   : > { %v331_v2 = vand.u32 65535, %v327_v0  ;;  %v332_v3 = vshrl.u32 %v327_v0, 16  ;;  %v1268_v16 = vor.u32 %v455_v1, %v454_v57  ;;  %v457_v17 = vshll.u32 %v1123_v35, %v1223_v26 }
  0xab   : > { %v356_v20 = vmul.u32 %v354_v9, %v1221_v25  ;;  %v357_v21 = vmul.u32 %v353_v7, %v330_v33  ;;  %v458_v22 = vshrl.u32 %v1124_v38, %v1235_v49  ;;  %v355_v23 = vmul.u32 %v353_v7, %v1221_v25 }
  0xac   : > { %v334_v14 = vmul.u32 %v332_v3, %v1221_v25  ;;  %v335_v15 = vmul.u32 %v331_v2, %v330_v33  ;;  %v333_v18 = vmul.u32 %v331_v2, %v1221_v25  ;;  %v336_v24 = vmul.u32 %v332_v3, %v330_v33 }
  0xad   : > { %v358_v31 = vmul.u32 %v354_v9, %v330_v33  ;;  %v359_v37 = vshll.u32 %v356_v20, 16  ;;  %v361_v40 = vshll.u32 %v357_v21, 16  ;;  %v460_v35 = vshll.u32 %v1124_v38, %v1223_v26 }
  0xae   : > { %v337_v30 = vshll.u32 %v334_v14, 16  ;;  %v338_v32 = vshrl.u32 %v334_v14, 16  ;;  %v339_v34 = vshll.u32 %v335_v15, 16  ;;  %v340_v36 = vshrl.u32 %v335_v15, 16 }
  0xaf   : > { %v1127_v42 = vmov 0   ;;  %vm363_vm9 = vc.u32 %v355_v23, %v359_v37  ;;  %v365_v45 = vadd.s32 %v359_v37, %v355_v23  ;;  %v461_v46 = vshrl.u32 %v1125_v41, %v1235_v49 }
  0xb0   : > { %vm341_vm8 = vc.u32 %v333_v18, %v337_v30  ;;  %v343_v39 = vadd.s32 %v337_v30, %v333_v18  ;;  %v364_v25 = vsel %vm363_vm9, 1, %v1127_v42  ;;  %v463_v33 = vshll.u32 %v1125_v41, %v1223_v26 }
  0xb1   : > { %v342_v43 = vsel %vm341_vm8, 1, %v1127_v42  ;;  %v366_v50 = vadd.s32 %v364_v25, %v358_v31  ;;  %vm367_vm11 = vc.u32 %v365_v45, %v361_v40  ;;  %v459_v38 = vor.u32 %v458_v22, %v457_v17 }
  0xb2   : > { %v344_v47 = vadd.s32 %v342_v43, %v336_v24  ;;  %vm345_vm10 = vc.u32 %v343_v39, %v339_v34  ;;  %v368_v52 = vsel %vm367_vm11, 1, %v1127_v42  ;;  %v462_v53 = vor.u32 %v461_v46, %v460_v35 }
  0xb3   : > { %v346_v48 = vsel %vm345_vm10, 1, %v1127_v42  ;;  %v464_v54 = vshrl.u32 %v1126_v44, %v1235_v49  ;;  %v360_v55 = vshrl.u32 %v356_v20, 16  ;;  %v370_v56 = vadd.s32 %v368_v52, %v366_v50 }
  0xb4   : > { %v348_v51 = vadd.s32 %v346_v48, %v344_v47  ;;  %vm466_vm12 = vcmp.lt.s32.totalorder %v1263_v12, 1  ;;  %vm468_vm13 = vcmp.lt.s32.totalorder %v1263_v12, 3  ;;  %vm467_vm14 = vcmp.lt.s32.totalorder %v1263_v12, 2 }
  0xb5   : > { %v465_v26 = vor.u32 %v464_v54, %v463_v33  ;;  %vm469_vm15 = vcmp.lt.s32.totalorder %v1263_v12, 4  ;;  %v362_v41 = vshrl.u32 %v357_v21, 16  ;;  %v371_v58 = vadd.s32 %v370_v56, %v360_v55 }
  0xb6   : > { %v349_v57 = vadd.s32 %v348_v51, %v338_v32  ;;  %v474_v59 = vsel %vm466_vm12, %v1265_v13, %v1268_v16  ;;  %v475_v44 = vsel %vm469_vm15, %v462_v53, 920167782  ;;  %v1298_v61 = vadd.s32 %v365_v45, %v361_v40 }
  0xb7   : > { %v476_v62 = vsel %vm468_vm13, %v459_v38, %v475_v44  ;;  %v478_v63 = vsel %vm466_vm12, %v1268_v16, %v459_v38  ;;  %v319_v0 = vsel %vm313_vm5, %v316_v10, %v318_v11  ;;  %v372_v1 = vadd.s32 %v371_v58, %v362_v41 }
  0xb8   : > { %v1296_v60 = vadd.s32 %v349_v57, %v340_v36  ;;  %v477_v2 = vsel %vm467_vm14, %v474_v59, %v476_v62  ;;  %v479_v3 = vsel %vm469_vm15, %v465_v26, 1326507024  ;;  %v483_v9 = vand.u32 65535, %v1225_v27 }
  0xb9   : > { %v480_v7 = vsel %vm468_vm13, %v462_v53, %v479_v3  ;;  %v507_v14 = vand.u32 65535, %v477_v2  ;;  %v376_v15 = vadd.s32 1, %v372_v1  ;;  %v484_v10 = vshrl.u32 %v1225_v27, 16 }
  0xba   : > { %vm375_vm0 = vc.u32 %v1296_v60, %v1298_v61  ;;  %v481_v28 = vsel %vm467_vm14, %v478_v63, %v480_v7  ;;  %v508_v11 = vshrl.u32 %v477_v2, 16  ;;  %v373_v17 = vmul.u32 %v1218_v19, %v319_v0 }
  0xbb   : > { %v485_v18 = vand.u32 65535, %v481_v28  ;;  %v486_v20 = vshrl.u32 %v481_v28, 16  ;;  %v377_v21 = vsel %vm375_vm0, %v376_v15, %v372_v1  ;;  %v511_v24 = vmul.u32 %v507_v14, %v484_v10 }
  0xbc   : > { %v510_v22 = vmul.u32 %v508_v11, %v483_v9  ;;  %v378_v30 = vadd.s32 %v377_v21, %v373_v17  ;;  %v509_v32 = vmul.u32 %v507_v14, %v483_v9  ;;  %v512_v34 = vmul.u32 %v508_v11, %v484_v10 }
  0xbd   : > { %v488_v23 = vmul.u32 %v486_v20, %v483_v9  ;;  %v489_v31 = vmul.u32 %v485_v18, %v484_v10  ;;  %v487_v39 = vmul.u32 %v485_v18, %v483_v9  ;;  %v490_v40 = vmul.u32 %v486_v20, %v484_v10 }
  0xbe   : > { %v513_v36 = vshll.u32 %v510_v22, 16  ;;  %v379_v37 = vadd.s32 536870912, %v378_v30  ;;  %v515_v45 = vshll.u32 %v511_v24, 16  ;;  %v450_v33 = vshrl.u32 %v1121_v29, %v1235_v49 }
  0xbf   : > { %v491_v35 = vshll.u32 %v488_v23, 16  ;;  %v493_v43 = vshll.u32 %v489_v31, 16  ;;  %v471_v52 = vsel %vm469_vm15, %v459_v38, 2102212464  ;;  %v492_v57 = vshrl.u32 %v488_v23, 16 }
  0xc0   : > { %vm517_vm1 = vc.u32 %v509_v32, %v513_v36  ;;  %v519_v46 = vadd.s32 %v513_v36, %v509_v32  ;;  %v1320_v19 = vshrl.u32 %v379_v37, 30  ;;  %v470_v29 = vsel %vm466_vm12, %v450_v33, %v1265_v13 }
  0xc1   : > { %vm495_vm2 = vc.u32 %v487_v39, %v491_v35  ;;  %v497_v47 = vadd.s32 %v491_v35, %v487_v39  ;;  %v518_v25 = vsel %vm517_vm1, 1, %v1127_v42  ;;  %v472_v49 = vsel %vm468_vm13, %v1268_v16, %v471_v52 }
  0xc2   : > { %v496_v48 = vsel %vm495_vm2, 1, %v1127_v42  ;;  %v520_v50 = vadd.s32 %v518_v25, %v512_v34  ;;  %vm521_vm3 = vc.u32 %v519_v46, %v515_v45  ;;  %v381_v51 = vshll.u32 %v1320_v19, 30 }
  0xc3   : > { %v498_v53 = vadd.s32 %v496_v48, %v490_v40  ;;  %vm499_vm4 = vc.u32 %v497_v47, %v493_v43  ;;  %v522_v55 = vsel %vm521_vm3, 1, %v1127_v42  ;;  %v514_v58 = vshrl.u32 %v510_v22, 16 }
  0xc4   : > { %v500_v54 = vsel %vm499_vm4, 1, %v1127_v42  ;;  %v382_v56 = vsub.s32 %v378_v30, %v381_v51  ;;  %v524_v41 = vadd.s32 %v522_v55, %v520_v50  ;;  %v494_v59 = vshrl.u32 %v489_v31, 16 }
  0xc5   : > { %v502_v26 = vadd.s32 %v500_v54, %v498_v53  ;;  %v516_v62 = vshrl.u32 %v511_v24, 16  ;;  %v523_v1 = vadd.s32 %v519_v46, %v515_v45  ;;  %v473_v3 = vsel %vm467_vm14, %v470_v29, %v472_v49 }
  0xc6   : > { %vm383_vm5 = vcmp.lt.s32.totalorder %v382_v56, 0  ;;  %v384_v38 = vsub.s32 0, %v382_v56  ;;  %v525_v63 = vadd.s32 %v524_v41, %v514_v58  ;;  %v527_v16 = vmul.u32 %v1225_v27, %v473_v3 }
  0xc7   : > { %v503_v44 = vadd.s32 %v502_v26, %v492_v57  ;;  %v374_v10 = vadd.s32 %v1298_v61, %v1296_v60  ;;  %vm282_vm9 = vcmp.lt.s32.totalorder %v1206_v4, 0  ;;  %vm1348_vm10 = vcmp.le.f32.partialorder %v280_v6, 0.7853982 }
  0xc8   : > { %v385_v42 = vsel %vm383_vm5, %v384_v38, %v382_v56  ;;  %v526_v7 = vadd.s32 %v525_v63, %v516_v62  ;;  %v404_v6 = vsub.s32 4, %v1320_v19  ;;  %vm239_vm12 = vcmask 7168  }
  0xc9   : > { %v504_v0 = vadd.s32 %v503_v44, %v494_v59  ;;  %v386_v2 = vclz %v385_v42  ;;  %vm436_vm13 = vcmp.lt.s32.totalorder %v1208_v5, 0  ;;  %vm1373_vm14 = vcmp.le.f32.partialorder %v434_v8, 0.7853982 }
  0xca   : > { %v530_v9 = vadd.s32 1, %v526_v7  ;;  %v405_v29 = vsel %vm282_vm9, %v404_v6, %v1320_v19  ;;  %vm423_vm2 = vweird.f32 %v1206_v4  ;;  %vm596_vm3 = vcmask 261120  }
  0xcb   : > { %vm529_vm6 = vc.u32 %v504_v0, %v523_v1  ;;  %v877_v13 = vadd.s32 4294967294, %v386_v2  ;;  %v528_v33 = vadd.s32 %v523_v1, %v504_v0  ;;  %v407_v44 = vsel %vm1348_vm10, 0, %v405_v29 }
  0xcc   : > { %v531_v14 = vsel %vm529_vm6, %v530_v9, %v526_v7  ;;  %v424_v3 = vand.u32 3, %v407_v44  ;;  %v1128_v9 = vmov 0.0  }
  0xcd   : > { %vm878_vm7 = vcmp.lt.s32.totalorder %v877_v13, 0  ;;  %v532_v28 = vadd.s32 %v531_v14, %v527_v16  ;;  %240 = vst.msk [vmem:[%s1364_s8] sm:$0xff] %vm239_vm12, %v1128_v9 }
  0xce   : > { %v389_v15 = vsel %vm878_vm7, 0, %v877_v13  ;;  %241 = vst.msk [vmem:[%s1364_s8 + $0x8] sm:$0xff] %vm239_vm12, %v1128_v9  ;;  %vm426_vm15 = vcmp.eq.s32.totalorder %v424_v3, 0  ;;  %vm429_vm0 = vcmp.eq.s32.totalorder %v424_v3, 2  ;;  %vm425_vm1 = vcmp.lt.s32.totalorder %v424_v3, 2 }
  0xcf   : > { %v390_v11 = vsub.s32 32, %v389_v15  ;;  %v394_v17 = vsub.s32 4294967266, %v389_v15  ;;  %v533_v18 = vadd.s32 536870912, %v532_v28  ;;  %v391_v20 = vshll.u32 %v382_v56, %v389_v15 }
  0xd0   : > { %vm577_vm7 = vweird.f32 %v1208_v5 }
  0xd1   : > { %v392_v21 = vshrl.u32 %v374_v10, %v390_v11  ;;  %v395_v12 = vadd.s32 127, %v394_v17  ;;  %v1342_v22 = vshrl.u32 %v533_v18, 30  ;;  %v1016_v11 = vld [vmem:[%s1449_s2] ss:$0 sm:$0xff] }
  0xd3   : > { %v393_v24 = vor.u32 %v392_v21, %v391_v20  ;;  %v396_v30 = vshll.u32 %v395_v12, 23  ;;  %v535_v23 = vshll.u32 %v1342_v22, 30 }
  0xd5   : > { %v397_v27 = vor.u32 4788187, %v396_v30  ;;  %v536_v31 = vsub.s32 %v532_v28, %v535_v23  ;;  %v400_v34 = vcvt.s32.f32 %v393_v24  ;;  %v558_v30 = vsub.s32 4, %v1342_v22 }
  0xd7   : > { %v398_v32 = vand.u32 2147483647, %v397_v27  ;;  %vm537_vm8 = vcmp.lt.s32.totalorder %v536_v31, 0  ;;  %v538_v36 = vsub.s32 0, %v536_v31 }
  0xd9   : > { %v401_v37 = vmul.f32 %v400_v34, %v398_v32  ;;  %v539_v60 = vsel %vm537_vm8, %v538_v36, %v536_v31 }
  0xda   : > { %v540_v39 = vclz %v539_v60 }
  0xdb   : > { %v402_v61 = vxor.u32 2147483648, %v401_v37 }
  0xdc   : > { %v880_v43 = vadd.s32 4294967294, %v540_v39 }
  0xdd   : > { %v403_v35 = vsel %vm282_vm9, %v402_v61, %v401_v37  ;;  %v559_v37 = vsel %vm436_vm13, %v558_v30, %v1342_v22 }
  0xde   : > { %v406_v45 = vsel %vm1348_vm10, %v1206_v4, %v403_v35  ;;  %vm881_vm11 = vcmp.lt.s32.totalorder %v880_v43, 0  ;;  %v561_v61 = vsel %vm1373_vm14, 0, %v559_v37 }
  0xdf   : > { %v408_v46 = vmul.f32 %v406_v45, %v406_v45  ;;  %v543_v47 = vsel %vm881_vm11, 0, %v880_v43 }
  0xe0   : > { %v544_v48 = vsub.s32 32, %v543_v47  ;;  %v548_v50 = vsub.s32 4294967266, %v543_v47  ;;  %v545_v53 = vshll.u32 %v536_v31, %v543_v47 }
  0xe1   : > { %v416_v25 = vmul.f32 -0.00019511016, %v408_v46  ;;  %v409_v51 = vmul.f32 -0.001358992, %v408_v46 }
  0xe2   : > { %v546_v54 = vshrl.u32 %v528_v33, %v544_v48  ;;  %v549_v55 = vadd.s32 127, %v548_v50 }
  0xe3   : > { %v417_v52 = vadd.f32 0.008332121, %v416_v25  ;;  %v410_v56 = vadd.f32 0.041655596, %v409_v51 }
  0xe4   : > { %v547_v26 = vor.u32 %v546_v54, %v545_v53  ;;  %v550_v41 = vshll.u32 %v549_v55, 23  ;;  %v589_v55 = vld [vmem:[%s1364_s8 + $0x8] sm:$0xff] }
  0xe5   : > { %v418_v57 = vmul.f32 %v417_v52, %v408_v46  ;;  %v411_v49 = vmul.f32 %v410_v56, %v408_v46  ;;  %v588_v52 = vld [vmem:[%s1364_s8] sm:$0xff] }
  0xe6   : > { %v551_v38 = vor.u32 4788187, %v550_v41  ;;  %v554_v42 = vcvt.s32.f32 %v547_v26 }
  0xe7   : > { %v419_v58 = vadd.f32 -0.16666654, %v418_v57  ;;  %v412_v59 = vadd.f32 -0.4999988, %v411_v49 }
  0xe8   : > { %v552_v63 = vand.u32 2147483647, %v551_v38 }
  0xe9   : > { %v420_v62 = vmul.f32 %v419_v58, %v408_v46  ;;  %v413_v0 = vmul.f32 %v412_v59, %v408_v46 }
  0xea   : > { %v555_v2 = vmul.f32 %v554_v42, %v552_v63 }
  0xeb   : > { %v421_v1 = vadd.f32 1.0, %v420_v62  ;;  %v414_v7 = vadd.f32 1.0, %v413_v0 }
  0xec   : > { %v556_v19 = vxor.u32 2147483648, %v555_v2 }
  0xed   : > { %v422_v13 = vmul.f32 %v421_v1, %v406_v45  ;;  %v430_v16 = vxor.u32 2147483648, %v414_v7  ;;  %v578_v45 = vand.u32 3, %v561_v61 }
  0xee   : > { %v557_v28 = vsel %vm436_vm13, %v556_v19, %v555_v2 }
  0xef   : > { %v427_v14 = vxor.u32 2147483648, %v422_v13  ;;  %v560_v10 = vsel %vm1373_vm14, %v1208_v5, %v557_v28  ;;  %v431_v8 = vsel %vm429_vm0, %v430_v16, %v422_v13  ;;  %vm580_vm4 = vcmp.eq.s32.totalorder %v578_v45, 0 }
  0xf0   : > { %v562_v17 = vmul.f32 %v560_v10, %v560_v10  ;;  %vm583_vm5 = vcmp.eq.s32.totalorder %v578_v45, 2  ;;  %vm579_vm6 = vcmp.lt.s32.totalorder %v578_v45, 2 }
  0xf1   : > { %v428_v18 = vsel %vm426_vm15, %v414_v7, %v427_v14 }
  0xf2   : > { %v432_v20 = vsel %vm425_vm1, %v428_v18, %v431_v8  ;;  %v570_v21 = vmul.f32 -0.00019511016, %v562_v17  ;;  %v563_v24 = vmul.f32 -0.001358992, %v562_v17 }
  0xf3   : > { %v433_v12 = vsel %vm423_vm2, nan, %v432_v20 }
  0xf4   : > { %v594_v23 = vmul.f32 %v1016_v11, %v433_v12  ;;  %v571_v27 = vadd.f32 0.008332121, %v570_v21  ;;  %v564_v31 = vadd.f32 0.041655596, %v563_v24 }
  0xf6   : > { %v597_v32 = vsel %vm596_vm3, %v594_v23, 0.0  ;;  %v572_v34 = vmul.f32 %v571_v27, %v562_v17  ;;  %v565_v36 = vmul.f32 %v564_v31, %v562_v17 }
  0xf7   : > { %598 = vadd.xlane.f32.xlu0 %v597_v32 }
  0xf8   : > { %v573_v4 = vadd.f32 -0.16666654, %v572_v34  ;;  %v566_v60 = vadd.f32 -0.4999988, %v565_v36 }
  0xfa   : > { %v574_v39 = vmul.f32 %v573_v4, %v562_v17  ;;  %v567_v40 = vmul.f32 %v566_v60, %v562_v17 }
  0xfc   : > { %v575_v35 = vadd.f32 1.0, %v574_v39  ;;  %v568_v43 = vadd.f32 1.0, %v567_v40 }
  0xfe   : > { %v576_v46 = vmul.f32 %v575_v35, %v560_v10  ;;  %v584_v47 = vxor.u32 2147483648, %v568_v43 }
 0x100   : > { %v581_v25 = vxor.u32 2147483648, %v576_v46  ;;  %v585_v33 = vsel %vm583_vm5, %v584_v47, %v576_v46 }
 0x102   : > { %v582_v22 = vsel %vm580_vm4, %v568_v43, %v581_v25 }
 0x103   : > { %v586_v48 = vsel %vm579_vm6, %v582_v22, %v585_v33 }
 0x104   : > { %v587_v50 = vsel %vm577_vm7, nan, %v586_v48 }
 0x105   : > { %v595_v6 = vmul.f32 %v1016_v11, %v587_v50 }
 0x107   : > { %v600_v51 = vsel %vm596_vm3, %v595_v6, 0.0 }
 0x108   : > { %601 = vadd.xlane.f32.xlu0 %v600_v51 }
 0x16a   : > { %v599_v53 = vpop.xlane.xlu0 %598 }
 0x16b   : > { %v603_v54 = vadd.f32 %v599_v53, %v588_v52 }
 0x16d   : > { %606 = vst.msk [vmem:[%s1364_s8] sm:$0xff] %vm239_vm12, %v603_v54 }
 0x17a   : > { %614 = sbr.rel (!%p1181_p3) target bundleno = 422 (0x1a6), region = 40 }
 0x17b   : > { %v602_v56 = vpop.xlane.xlu0 %601 }
 0x17c   : > { %v604_v57 = vadd.f32 %v602_v56, %v589_v55 }
 0x17e   : > { %607 = vst.msk [vmem:[%s1364_s8 + $0x8] sm:$0xff] %vm239_vm12, %v604_v57 }
 0x17f   : > { %s1463_s11 = smov (!%p617_p9, %s616_s11), 2 }
 0x180   : > { %s884_s23 = sshll.u32 %s1463_s11, 3 }
 0x181   : > { %p887_p10 = scmp.eq.s32.totalorder %s884_s23, 0 }
 0x182   : > { %s1414_s24 = sshrl.u32 (!%p887_p10), %s1463_s11, 1 }
 0x183   : > { %625 = sbr.rel (%p887_p10) target bundleno = 422 (0x1a6), region = 44  ;;  %p888_p11 = scmp.le.s32.totalorder (!%p887_p10), %s1414_s24, 0 }
 0x188   : > { %793 = sbr.rel (%p888_p11) target bundleno = 405 (0x195), region = 126  ;;  %s1089_s14 = smov (!%p888_p11), %s1408_s21  }
 0x189   : > { %s1093_s20 = smov (!%p888_p11), %s1364_s8   ;;  %s1097_s25 = smov (!%p888_p11), 0  }
 0x18a   : > { %s1101_s26 = smov (!%p888_p11), 0  }
 0x18d LB: >> { %v690_v5 = vld [vmem:[%s1095_s20] sm:$0xff]  ;;  %v692_v26 = vld [vmem:[%s1095_s20 + $0x8] sm:$0xff]  ;;  %s694_s27 = sadd.s32 1, %s1099_s25  ;;  %s684_s26 = sadd.s32 1, %s1103_s26   ;;  %s1103_s26 = sphi %s1101_s26, %s684_s26   ;;  %s1099_s25 = sphi %s1097_s25, %s1098_s25   ;;  %s1095_s20 = sphi %s1093_s20, %s699_s20   ;;  %s1091_s14 = sphi %s1089_s14, %s700_s14  }
 0x18e   : >> { %691 = vst [vmem:[%s1091_s14] sm:$0xff] %v690_v5  ;;  %p695_p12 = scmp.ge.s32.totalorder %s694_s27, %s1414_s24  ;;  %p683_p13 = scmp.ge.s32.totalorder %s684_s26, %s1414_s24 }
 0x18f   : >> { %693 = vst [vmem:[%s1091_s14 + $0x8] sm:$0xff] %v692_v26 }
 0x190   : >> { %s1465_s27 = smov (%p695_p12, %s694_s27), 0  ;;  %686 = sbr.rel (!%p683_p13) target bundleno = 397 (0x18d), region = 132 }
 0x191   : >> { %s889_s28 = sshll.u32 %s1465_s27, 4  ;;  %s1098_s25 = smov %s1465_s27  }
 0x192   : >> { %s699_s20 = scalar_lea.vmem %s1364_s8, %s889_s28 [#allocation2]   ;;  %s700_s14 = scalar_lea.vmem %s1408_s21, %s889_s28  }
 0x195 PF: > { %s1424_s29 = sand.u32 1, %s1463_s11   ;;  %s900_s30 = sshll.u32 %s1414_s24, 4 }
 0x196   : > { %s705_s4 = scalar_lea.vmem %s1364_s8, %s900_s30 [#allocation2]   ;;  %s707_s5 = scalar_lea.vmem %s1408_s21, %s900_s30  }
 0x197   : > { %p894_p0 = scmp.le.s32.totalorder %s1424_s29, 0 }
 0x198   : > { %s1105_s6 = smov (!%p894_p0), %s707_s5   ;;  %s1109_s7 = smov (!%p894_p0), %s705_s4  }
 0x199   : > { %807 = sbr.rel (%p894_p0) target bundleno = 422 (0x1a6), region = 137  ;;  %s1113_s9 = smov (!%p894_p0), 0  }
 0x19a   : > { %s1117_s10 = smov (!%p894_p0), 0  }
 0x19e LB: >> { %v717_v41 = vld [vmem:[%s1111_s7] sm:$0xff]  ;;  %s719_s11 = sadd.s32 1, %s1115_s9  ;;  %s711_s10 = sadd.s32 1, %s1119_s10   ;;  %s1119_s10 = sphi %s1117_s10, %s711_s10   ;;  %s1115_s9 = sphi %s1113_s9, %s1114_s9   ;;  %s1111_s7 = sphi %s1109_s7, %s724_s7   ;;  %s1107_s6 = sphi %s1105_s6, %s725_s6  }
 0x19f   : >> { %718 = vst [vmem:[%s1107_s6] sm:$0xff] %v717_v41  ;;  %p720_p1 = scmp.ge.s32.totalorder %s719_s11, %s1424_s29  ;;  %p710_p2 = scmp.ge.s32.totalorder %s711_s10, %s1424_s29 }
 0x1a1   : >> { %s1467_s11 = smov (%p720_p1, %s719_s11), 0  ;;  %713 = sbr.rel (!%p710_p2) target bundleno = 414 (0x19e), region = 143 }
 0x1a2   : >> { %s895_s8 = sshll.u32 %s1467_s11, 3  ;;  %s1114_s9 = smov %s1467_s11  }
 0x1a3   : >> { %s724_s7 = scalar_lea.vmem %s705_s4, %s895_s8 [#allocation2]   ;;  %s725_s6 = scalar_lea.vmem %s707_s5, %s895_s8  }
 0x1a6 PF: > { %s13_s16 = sadd.s32 1, %s1087_s16   ;;  %s1456_s12 = smov %s1075_s13 }
 0x1a7   : > { %p10_p3 = scmp.ge.s32.totalorder %s13_s16, 7   ;;  %s1457_s13 = smov %s1190_s22 }
 0x1a8   : > { %s1458_s14 = smov %s1083_s15  ;;  %s1459_s15 = smov %s1461_s18 }
 0x1a9   :  { %12 = sbr.rel (!%p10_p3) target bundleno = 3 (0x3), region = 154 }

</bundles_post_ra>
